<compile_context>
chip_gen: v7x
topology: tpu7x:2x2x1
jax: 0.10.0
libtpu: 0.0.40
codegen_flags: <defaults>
</compile_context>

<pallas_src>
import functools

import jax
import jax.numpy as jnp
from jax.experimental import pallas as pl
from jax.experimental.pallas import tpu as pltpu

KERNEL_MUL = 2.0
KERNEL_NUM = 5


def _round_up(x, m):
    return ((x + m - 1) // m) * m


def _pick_tile(n):
    """Row-tile size for the (N, N) kernel-matrix plane.

    Lane-dense (multiple of 128) tiles once the problem is big enough so the
    gram outputs map cleanly onto the MXU; for small N a single sublane-aligned
    tile (rows are padded up to it and masked via zero weights).
    """
    if n >= 512:
        return 256
    if n >= 128:
        return 128
    return _round_up(n, 8)


def _mmd_tile_kernel(s_ref, xr_ref, xc_ref, hsqr_ref, hsqc_ref, wr_ref, wc_ref,
                     out_ref, *, kernel_mul, kernel_num):
    """One (row-tile i, col-tile j) block of the summed RBF kernel matrix."""
    # j is the reduction axis: the per-i output block stays resident across j
    # and is used directly as the accumulator (init at j == 0).
    @pl.when(pl.program_id(1) == 0)
    def _():
        out_ref[...] = jnp.zeros_like(out_ref)

    # gram = x_i . x_j on the MXU; the column block is already (D, tile), so
    # this is a plain A @ B with no in-kernel transpose.
    gram = jnp.dot(xr_ref[...], xc_ref[...], preferred_element_type=jnp.float32)

    # 0.5 * ||x_i - x_j||^2  (the factor 2 is folded into the bandwidth scalar;
    # the max() only clamps negative round-off).
    d = jnp.maximum(hsqr_ref[...] + hsqc_ref[...] - gram, 0.0)

    s = s_ref[0, 0]  # -2 / bandwidth_0 (data dependent, from SMEM)
    if kernel_mul == 2.0:
        # Geometric bandwidth chain: one EUP exp, remaining kernels via
        # repeated squaring on the VPU (e, e^2, e^4, ...).
        inv_min = s * jnp.float32(1.0 / (kernel_mul ** (kernel_num - 1)))
        e = jnp.exp(d * inv_min)
        ksum = e
        p = e
        for _ in range(kernel_num - 1):
            p = p * p
            ksum = ksum + p
    else:
        ksum = jnp.zeros_like(d)
        for i in range(kernel_num):
            ksum = ksum + jnp.exp(d * (s * jnp.float32(1.0 / (kernel_mul ** i))))

    # Signed quadrant weights (+1 source rows, -1 target rows, 0 padding)
    # implement XX + YY - XY - YX and the padding mask in one reduction.
    partial = jnp.sum(ksum * (wr_ref[...] * wc_ref[...]))
    out_ref[...] += partial


def mmd_loss_rbf(source, target, kernel_mul=KERNEL_MUL, kernel_num=KERNEL_NUM):
    """Pallas implementation of MMD_loss(kernel_type='rbf').forward."""
    assert source.ndim == 2 and source.shape == target.shape
    b, feat = source.shape
    n = 2 * b
    f32 = jnp.float32

    # ---- cheap O(N*D) prep in the wrapper; all O(N^2) work is in the grid.
    total = jnp.concatenate([source, target], axis=0).astype(f32)
    # Centering preserves pairwise distances but removes catastrophic
    # cancellation in the closed-form bandwidth / ||xi||^2+||xj||^2-2xi.xj path.
    centered = total - jnp.mean(total, axis=0, keepdims=True)

    # Keep bf16 operands bf16 for the gram matmul (native MXU); stats in f32.
    mat_dtype = jnp.bfloat16 if source.dtype == jnp.bfloat16 else f32
    x_mat = centered.astype(mat_dtype)
    xf = x_mat.astype(f32)
    sq = jnp.sum(xf * xf, axis=-1)                       # (n,) row squared norms

    # Data-dependent bandwidth, closed form:
    #   sum_ij ||xi-xj||^2 = 2n*sum_i ||xi||^2 - 2*||sum_i xi||^2
    col = jnp.sum(xf, axis=0)
    sum_l2 = 2.0 * n * jnp.sum(sq) - 2.0 * jnp.sum(col * col)
    bandwidth = sum_l2 / f32(n * n - n)
    bandwidth = bandwidth / f32(kernel_mul ** (kernel_num // 2))
    # Single scalar divide; fold the -2 of the L2 identity in here so the
    # kernel never scales the (tile, tile) result.
    s = jnp.reshape(-2.0 / bandwidth, (1, 1)).astype(f32)

    # ---- pad rows to a tile multiple; padded rows get weight 0.
    tile = _pick_tile(n)
    n_pad = _round_up(n, tile)
    nt = n_pad // tile
    pad = n_pad - n

    x_rows = jnp.pad(x_mat, ((0, pad), (0, 0)))          # (n_pad, D)
    x_cols = x_rows.T                                    # (D, n_pad) one-time relayout
    hsq = jnp.pad(0.5 * sq, (0, pad))
    hsq_row = hsq.reshape(n_pad, 1)
    hsq_col = hsq.reshape(1, n_pad)
    w = jnp.concatenate([jnp.ones((b,), f32), -jnp.ones((b,), f32),
                         jnp.zeros((pad,), f32)])
    w_row = w.reshape(n_pad, 1)
    w_col = w.reshape(1, n_pad)

    kernel = functools.partial(_mmd_tile_kernel,
                               kernel_mul=float(kernel_mul),
                               kernel_num=int(kernel_num))

    partials = pl.pallas_call(
        kernel,
        out_shape=jax.ShapeDtypeStruct((nt * 8, 128), f32),
        grid=(nt, nt),
        in_specs=[
            pl.BlockSpec(memory_space=pltpu.MemorySpace.SMEM),   # -2/bandwidth
            pl.BlockSpec((tile, feat), lambda i, j: (i, 0)),     # row slab
            pl.BlockSpec((feat, tile), lambda i, j: (0, j)),     # col slab (pre-T)
            pl.BlockSpec((tile, 1), lambda i, j: (i, 0)),        # 0.5*||xi||^2
            pl.BlockSpec((1, tile), lambda i, j: (0, j)),        # 0.5*||xj||^2 (row layout)
            pl.BlockSpec((tile, 1), lambda i, j: (i, 0)),        # row weights
            pl.BlockSpec((1, tile), lambda i, j: (0, j)),        # col weights
        ],
        out_specs=pl.BlockSpec((8, 128), lambda i, j: (i, 0)),
        compiler_params=pltpu.CompilerParams(
            dimension_semantics=("parallel", "arbitrary"),
            vmem_limit_bytes=32 * 1024 * 1024),
    )(s, x_rows, x_cols, hsq_row, hsq_col, w_row, w_col)

    # Every element of output block i holds that row-tile's accumulated sum.
    per_row_tile = partials.reshape(nt, 8, 128)[:, 0, 0]
    return jnp.sum(per_row_tile) / f32(b * b)


def _mmd_loss_rbf_ref(source, target, kernel_mul=KERNEL_MUL, kernel_num=KERNEL_NUM):
    """Pure-JAX reference mirroring the PyTorch module."""
    batch_size = source.shape[0]
    total = jnp.concatenate([source, target], axis=0).astype(jnp.float32)
    n = total.shape[0]
    diff = total[None, :, :] - total[:, None, :]
    l2 = jnp.sum(diff * diff, axis=2)
    bandwidth = jnp.sum(l2) / (n * n - n)
    bandwidth = bandwidth / (kernel_mul ** (kernel_num // 2))
    kernels = sum(jnp.exp(-l2 / (bandwidth * kernel_mul ** i))
                  for i in range(kernel_num))
    b = batch_size
    return (jnp.mean(kernels[:b, :b]) + jnp.mean(kernels[b:, b:])
            - jnp.mean(kernels[:b, b:]) - jnp.mean(kernels[b:, :b]))


if __name__ == "__main__":
    key = jax.random.PRNGKey(0)
    k1, k2 = jax.random.split(key)
    batch, hidden = 8, 32
    source = jax.random.normal(k1, (batch, hidden), dtype=jnp.float32)
    target = jax.random.normal(k2, (batch, hidden), dtype=jnp.float32) + 0.5

    loss = jax.block_until_ready(mmd_loss_rbf(source, target))
    ref = jax.block_until_ready(_mmd_loss_rbf_ref(source, target))

    assert jnp.allclose(loss, ref, rtol=1e-3, atol=1e-5), (loss, ref)
    print("KERNEL_OK")
</pallas_src>

<mosaic_0001>
module attributes {stable_mosaic.version = 11 : i64} {
  func.func @_mmd_tile_kernel(%arg0: i32, %arg1: i32, %arg2: memref<1x1xf32, #tpu.memory_space<smem>>, %arg3: memref<16x32xf32, #tpu.memory_space<vmem>>, %arg4: memref<32x16xf32, #tpu.memory_space<vmem>>, %arg5: memref<16x1xf32, #tpu.memory_space<vmem>>, %arg6: memref<1x16xf32, #tpu.memory_space<vmem>>, %arg7: memref<16x1xf32, #tpu.memory_space<vmem>>, %arg8: memref<1x16xf32, #tpu.memory_space<vmem>>, %arg9: memref<8x128xf32, #tpu.memory_space<vmem>>) attributes {dimension_semantics = [#tpu.dimension_semantics<parallel>, #tpu.dimension_semantics<arbitrary>], iteration_bounds = array<i64: 1, 1>, scalar_prefetch = 0 : i64, scratch_operands = 0 : i64, tpu.core_type = #tpu.core_type<tc>, window_params = [{transform_indices = @transform_0, window_bounds = array<i64: 1, 1>}, {transform_indices = @transform_1, window_bounds = array<i64: 16, 32>}, {transform_indices = @transform_2, window_bounds = array<i64: 32, 16>}, {transform_indices = @transform_3, window_bounds = array<i64: 16, 1>}, {transform_indices = @transform_4, window_bounds = array<i64: 1, 16>}, {transform_indices = @transform_5, window_bounds = array<i64: 16, 1>}, {transform_indices = @transform_6, window_bounds = array<i64: 1, 16>}, {transform_indices = @transform_7, window_bounds = array<i64: 8, 128>}]} {
    %c0_i32 = arith.constant 0 : i32
    %0 = arith.cmpi eq, %arg1, %c0_i32 : i32
    %1 = arith.extui %0 : i1 to i32
    %c0_i32_0 = arith.constant 0 : i32
    %2 = arith.cmpi ne, %1, %c0_i32_0 : i32
    scf.if %2 {
      %cst_21 = arith.constant 0.000000e+00 : f32
      %41 = vector.broadcast %cst_21 : f32 to vector<8x128xf32>
      %c0_22 = arith.constant 0 : index
      %c0_23 = arith.constant 0 : index
      %42 = vector.load %arg9[%c0_22, %c0_23] : memref<8x128xf32, #tpu.memory_space<vmem>>, vector<8x128xf32>
      tpu.vector_store %arg9[%c0_22, %c0_23], %41 {strides = array<i32>} : memref<8x128xf32, #tpu.memory_space<vmem>>, vector<8x128xf32>,
    } else {
    }
    %c0 = arith.constant 0 : index
    %c0_1 = arith.constant 0 : index
    %3 = vector.load %arg3[%c0, %c0_1] : memref<16x32xf32, #tpu.memory_space<vmem>>, vector<16x32xf32>
    %c0_2 = arith.constant 0 : index
    %c0_3 = arith.constant 0 : index
    %4 = vector.load %arg4[%c0_2, %c0_3] : memref<32x16xf32, #tpu.memory_space<vmem>>, vector<32x16xf32>
    %cst = arith.constant dense<0.000000e+00> : vector<16x16xf32>
    %5 = tpu.matmul %3, %4, %cst {dimension_numbers = #tpu.dot_dimension_numbers<[1], [0], [0], [1], [0, 0, 1, 1], [], []>} : vector<16x32xf32>, vector<32x16xf32>, vector<16x16xf32> -> vector<16x16xf32>
    %c0_4 = arith.constant 0 : index
    %c0_5 = arith.constant 0 : index
    %6 = vector.load %arg5[%c0_4, %c0_5] : memref<16x1xf32, #tpu.memory_space<vmem>>, vector<16x1xf32>
    %c0_6 = arith.constant 0 : index
    %c0_7 = arith.constant 0 : index
    %7 = vector.load %arg6[%c0_6, %c0_7] : memref<1x16xf32, #tpu.memory_space<vmem>>, vector<1x16xf32>
    %8 = vector.broadcast %6 : vector<16x1xf32> to vector<16x16xf32>
    %9 = vector.broadcast %7 : vector<1x16xf32> to vector<16x16xf32>
    %10 = arith.addf %8, %9 : vector<16x16xf32>
    %11 = arith.subf %10, %5 : vector<16x16xf32>
    %cst_8 = arith.constant 0.000000e+00 : f32
    %12 = vector.broadcast %cst_8 : f32 to vector<16x16xf32>
    %13 = arith.maximumf %11, %12 : vector<16x16xf32>
    %c0_9 = arith.constant 0 : index
    %c0_10 = arith.constant 0 : index
    %14 = memref.load %arg2[%c0_9, %c0_10] : memref<1x1xf32, #tpu.memory_space<smem>>
    %cst_11 = arith.constant 6.250000e-02 : f32
    %15 = arith.mulf %14, %cst_11 : f32
    %16 = vector.broadcast %15 : f32 to vector<16x16xf32>
    %17 = arith.mulf %13, %16 : vector<16x16xf32>
    %18 = math.exp %17 : vector<16x16xf32>
    %19 = arith.mulf %18, %18 : vector<16x16xf32>
    %20 = arith.addf %18, %19 : vector<16x16xf32>
    %21 = arith.mulf %19, %19 : vector<16x16xf32>
    %22 = arith.addf %20, %21 : vector<16x16xf32>
    %23 = arith.mulf %21, %21 : vector<16x16xf32>
    %24 = arith.addf %22, %23 : vector<16x16xf32>
    %25 = arith.mulf %23, %23 : vector<16x16xf32>
    %26 = arith.addf %24, %25 : vector<16x16xf32>
    %c0_12 = arith.constant 0 : index
    %c0_13 = arith.constant 0 : index
    %27 = vector.load %arg7[%c0_12, %c0_13] : memref<16x1xf32, #tpu.memory_space<vmem>>, vector<16x1xf32>
    %c0_14 = arith.constant 0 : index
    %c0_15 = arith.constant 0 : index
    %28 = vector.load %arg8[%c0_14, %c0_15] : memref<1x16xf32, #tpu.memory_space<vmem>>, vector<1x16xf32>
    %29 = vector.broadcast %27 : vector<16x1xf32> to vector<16x16xf32>
    %30 = vector.broadcast %28 : vector<1x16xf32> to vector<16x16xf32>
    %31 = arith.mulf %29, %30 : vector<16x16xf32>
    %32 = arith.mulf %26, %31 : vector<16x16xf32>
    %33 = vector.shape_cast %32 : vector<16x16xf32> to vector<1x16x16xf32>
    %cst_16 = arith.constant dense<0.000000e+00> : vector<1xf32>
    %34 = vector.multi_reduction <add>, %33, %cst_16 [1, 2] : vector<1x16x16xf32> to vector<1xf32>
    %35 = vector.shape_cast %34 : vector<1xf32> to vector<1x1x1xf32>
    %36 = vector.extract %35[0, 0, 0] : f32 from vector<1x1x1xf32>
    %c0_17 = arith.constant 0 : index
    %c0_18 = arith.constant 0 : index
    %37 = vector.load %arg9[%c0_17, %c0_18] : memref<8x128xf32, #tpu.memory_space<vmem>>, vector<8x128xf32>
    %38 = vector.broadcast %36 : f32 to vector<8x128xf32>
    %39 = arith.addf %37, %38 : vector<8x128xf32>
    %c0_19 = arith.constant 0 : index
    %c0_20 = arith.constant 0 : index
    %40 = vector.load %arg9[%c0_19, %c0_20] : memref<8x128xf32, #tpu.memory_space<vmem>>, vector<8x128xf32>
    tpu.vector_store %arg9[%c0_19, %c0_20], %39 {strides = array<i32>} : memref<8x128xf32, #tpu.memory_space<vmem>>, vector<8x128xf32>,
    return
  }
  func.func @transform_0(%arg0: i32, %arg1: i32) -> (i32, i32) {
    %c0_i32 = arith.constant 0 : i32
    %c0_i32_0 = arith.constant 0 : i32
    %c0_i32_1 = arith.constant 0 : i32
    return %c0_i32, %c0_i32_0 : i32, i32
  }
  func.func @transform_1(%arg0: i32, %arg1: i32) -> (i32, i32) {
    %c0_i32 = arith.constant 0 : i32
    %c0_i32_0 = arith.constant 0 : i32
    return %arg0, %c0_i32 : i32, i32
  }
  func.func @transform_2(%arg0: i32, %arg1: i32) -> (i32, i32) {
    %c0_i32 = arith.constant 0 : i32
    %c0_i32_0 = arith.constant 0 : i32
    return %c0_i32, %arg1 : i32, i32
  }
  func.func @transform_3(%arg0: i32, %arg1: i32) -> (i32, i32) {
    %c0_i32 = arith.constant 0 : i32
    %c0_i32_0 = arith.constant 0 : i32
    return %arg0, %c0_i32 : i32, i32
  }
  func.func @transform_4(%arg0: i32, %arg1: i32) -> (i32, i32) {
    %c0_i32 = arith.constant 0 : i32
    %c0_i32_0 = arith.constant 0 : i32
    return %c0_i32, %arg1 : i32, i32
  }
  func.func @transform_5(%arg0: i32, %arg1: i32) -> (i32, i32) {
    %c0_i32 = arith.constant 0 : i32
    %c0_i32_0 = arith.constant 0 : i32
    return %arg0, %c0_i32 : i32, i32
  }
  func.func @transform_6(%arg0: i32, %arg1: i32) -> (i32, i32) {
    %c0_i32 = arith.constant 0 : i32
    %c0_i32_0 = arith.constant 0 : i32
    return %c0_i32, %arg1 : i32, i32
  }
  func.func @transform_7(%arg0: i32, %arg1: i32) -> (i32, i32) {
    %c0_i32 = arith.constant 0 : i32
    %c0_i32_0 = arith.constant 0 : i32
    return %arg0, %c0_i32 : i32, i32
  }
}

</mosaic_0001>

<bundles_post_ra>
// kernel: tpu_custom_call.1
= control target key start
LH: loop header
LB: loop body
LE: loop exit
PB: predicated region body
PF: predicated region fallthrough
CT: control target
= control target key end

     0   :  { %vm39_vm0 = vcmask 261120   ;;  %v289_v6 = vmov 0   ;;  %s384_s0 = inlined_call_operand.<no memory space> [shape: f32[1,1], index: 0, kind: input, shape index: {}]   ;;  %s385_s1 = inlined_call_operand.vmem [shape: f32[16,32], index: 1, kind: input, shape index: {}]   ;;  %s386_s2 = inlined_call_operand.vmem [shape: f32[32,16], index: 2, kind: input, shape index: {}]   ;;  %s387_s3 = inlined_call_operand.vmem [shape: f32[16,1], index: 3, kind: input, shape index: {}]   ;;  %s388_s4 = inlined_call_operand.vmem [shape: f32[1,16], index: 4, kind: input, shape index: {}]   ;;  %s389_s5 = inlined_call_operand.vmem [shape: f32[16,1], index: 5, kind: input, shape index: {}]   ;;  %s390_s6 = inlined_call_operand.vmem [shape: f32[1,16], index: 6, kind: input, shape index: {}]   ;;  %s391_s7 = inlined_call_operand.hbm [shape: f32[8,128], index: 7, kind: output, shape index: {}]  }
   0x1   :  { %v35_v0 = vld [vmem:[%s386_s2] sm:$0xff]  ;;  %v36_v1 = vld [vmem:[%s386_s2 + $0x8] sm:$0xff]  ;;  %v37_v2 = vld [vmem:[%s386_s2 + $0x10] sm:$0xff]  ;;  %259 = vset.pattern.permute.xlu0 %v289_v6  ;;  %260 = vset.pattern.permute.xlu1 %v289_v6 }
   0x2   :  { %v246_v3 = vpack.c.bf16 %v36_v1, %v35_v0  ;;  %v38_v4 = vld [vmem:[%s386_s2 + $0x18] sm:$0xff]  ;;  %v33_v5 = vld [vmem:[%s385_s1] sm:$0xff] }
   0x3   :  { %v250_v7 = vpack.c.bf16 %v38_v4, %v37_v2  ;;  %243 = vmatprep.mubr.msk.f32.mxu0 %vm39_vm0, %v33_v5  ;;  %v121_v8 = vld [vmem:[%s387_s3] sm:$0xff] }
   0x4   :  { %v171_v9 = vld [vmem:[%s389_s5] sm:$0xff]  ;;  %247 = vmatprep.subr.bf16.mxu0 %v246_v3  ;;  %126 = vperm.xlu0 %259, %v121_v8  }
   0x5   :  { %13 = vsyncpa [#allocation4], 0  ;;  %249 = vmatpush3.bf16.msra.mxu0 %v246_v3  ;;  %v122_v10 = vld [vmem:[%s387_s3 + $0x8] sm:$0xff]  ;;  %176 = vperm.xlu1 %260, %v171_v9   ;;  %v227_v14 = vld [vmem:[%s388_s4] ss:$0 sm:$0xff]  ;;  %s147_s23 = smul.f32 0.0625, %s384_s0 }
   0x6   :  { %251 = vmatprep.subr.bf16.mxu0 %v250_v7  ;;  %v172_v11 = vld [vmem:[%s389_s5 + $0x8] sm:$0xff]  ;;  %v228_v40 = vld [vmem:[%s390_s6] ss:$0 sm:$0xff]  ;;  %vm194_vm1 = vcmask 130048   ;;  %s290_s4 = smov [#allocation3]  }
   0x7   :  { %v34_v12 = vld [vmem:[%s385_s1 + $0x8] sm:$0xff]  ;;  %v148_v21 = vstv %s147_s23  ;;  %s217_s5 = sshll.u32 %s290_s4, 4  ;;  %s218_s5 = int_to_ptr.vmem [resolvable:$true] %s217_s5 }
   0x8   :  { %131 = vperm.xlu0 %259, %v122_v10   ;;  %s265_s24 = scalar_lea.vmem %s218_s5, 128  ;;  %p270_p1 = scmp.lt.s32.totalorder %s218_s5, %s218_s5 }
   0x9   :  { %253 = vmatpush3.bf16.msra.mxu0 %v250_v7  ;;  %181 = vperm.xlu1 %260, %v172_v11   ;;  %p266_p0 = scmp.ne.s32.totalorder %s218_s5, %s265_s24  ;;  %p271_p2 = scmp.lt.s32.totalorder %s265_s24, %s265_s24 }
   0xb   :  { %p272_p3 = por %p271_p2, %p270_p1 }
   0xc   :  { %244 = vmatmul.mubr.msk.f32.vlgmr.msra.gmra.mrb[0].mxu0 %vm39_vm0, %v34_v12 }
   0xd   :  { %p273_p4 = pnand %p272_p3, %p266_p0 }
  0x83   :  { %v127_v13 = vpop.permute.xlu0 %126 }
  0x84   :  { %v140_v17 = vadd.f32 %v227_v14, %v127_v13  ;;  %v177_v30 = vpop.permute.xlu1 %176 }
  0x85   :  { %v190_v51 = vmul.f32 %v228_v40, %v177_v30 }
  0x87   :  { %v132_v15 = vpop.permute.xlu0 %131 }
  0x88   :  { %v141_v16 = vadd.f32 %v227_v14, %v132_v15  ;;  %v182_v43 = vpop.permute.xlu1 %181 }
  0x89   :  { %v191_v49 = vmul.f32 %v228_v40, %v182_v43 }
  0xdf   :  { %v245_v18 = vpop.f32.mrb[0].mxu0 }
  0xe0   :  { %v143_v19 = vsub.f32 %v141_v16, %v245_v18  ;;  %v112_v20 = vpop.f32.mrb[1].mxu0 }
  0xe1   :  { %v142_v22 = vsub.f32 %v140_v17, %v112_v20 }
  0xe2   :  { %v145_v23 = vmax.f32 %v143_v19, 0.0 }
  0xe3   :  { %v144_v24 = vmax.f32 %v142_v22, 0.0 }
  0xe4   :  { %v150_v25 = vmul.f32 %v148_v21, %v145_v23 }
  0xe5   :  { %v149_v26 = vmul.f32 %v148_v21, %v144_v24 }
  0xe6   :  { %v153_v27 = vmul.f32 1.442695, %v150_v25 }
  0xe7   :  { %v151_v28 = vmul.f32 1.442695, %v149_v26 }
  0xe8   :  { %261 = vpow2.f32 %v153_v27 }
  0xe9   :  { %263 = vpow2.f32 %v151_v28 }
  0xf2   :  { %v262_v29 = vpop.eup %261 }
  0xf3   :  { %v264_v31 = vpop.eup %263  ;;  %v156_v32 = vmul.f32 %v262_v29, %v262_v29 }
  0xf4   :  { %v155_v33 = vmul.f32 %v264_v31, %v264_v31 }
  0xf5   :  { %v158_v34 = vadd.f32 %v262_v29, %v156_v32  ;;  %v160_v35 = vmul.f32 %v156_v32, %v156_v32 }
  0xf6   :  { %v157_v36 = vadd.f32 %v264_v31, %v155_v33  ;;  %v159_v37 = vmul.f32 %v155_v33, %v155_v33 }
  0xf7   :  { %v162_v38 = vadd.f32 %v160_v35, %v158_v34  ;;  %v164_v39 = vmul.f32 %v160_v35, %v160_v35 }
  0xf8   :  { %v161_v41 = vadd.f32 %v159_v37, %v157_v36  ;;  %v163_v42 = vmul.f32 %v159_v37, %v159_v37 }
  0xf9   :  { %v166_v44 = vadd.f32 %v164_v39, %v162_v38  ;;  %v168_v45 = vmul.f32 %v164_v39, %v164_v39 }
  0xfa   :  { %v165_v46 = vadd.f32 %v163_v42, %v161_v41  ;;  %v167_v47 = vmul.f32 %v163_v42, %v163_v42 }
  0xfb   :  { %v170_v48 = vadd.f32 %v168_v45, %v166_v44 }
  0xfc   :  { %v169_v50 = vadd.f32 %v167_v47, %v165_v46 }
  0xfd   :  { %v193_v52 = vmul.f32 %v191_v49, %v170_v48 }
  0xfe   :  { %v192_v53 = vmul.f32 %v190_v51, %v169_v50 }
  0xff   :  { %v196_v54 = vsel %vm194_vm1, %v193_v52, 0.0 }
 0x100   :  { %v195_v55 = vsel %vm194_vm1, %v192_v53, 0.0 }
 0x101   :  { %v197_v56 = vadd.f32 %v196_v54, %v195_v55 }
 0x103   :  { %198 = vadd.xlane.f32.xlu0 %v197_v56 }
 0x190   :  { %v199_v57 = vpop.xlane.xlu0 %198 }
 0x191   :  { %v200_v58 = vrot.slane %v199_v57, 4 }
 0x193   :  { %v201_v59 = vadd.f32 %v200_v58, %v199_v57 }
 0x195   :  { %v202_v60 = vrot.slane %v201_v59, 2 }
 0x197   :  { %v203_v61 = vadd.f32 %v202_v60, %v201_v59 }
 0x199   :  { %v204_v62 = vrot.slane %v203_v61, 1 }
 0x19b   :  { %v205_v63 = vadd.f32 %v204_v62, %v203_v61 }
 0x19d   :  { %254 = vpush %v205_v63 }
 0x1ce   :  { %s255_s6 = spop %254 }
 0x1cf   :  { %v208_v0 = vstv %s255_s6 }
 0x1d0   :  { %210 = vst [vmem:[#allocation3] sm:$0xff] %v208_v0 }
 0x1d1   :  { %276 = shalt.err (!%p273_p4)
}
 0x1d2   :  { %s277_s27 = scalar_lea.hbm %s391_s7, 128 }
 0x1d3   :  { %p278_p5 = scmp.ne.s32.totalorder %s391_s7, %s277_s27  ;;  %p281_p6 = scmp.lt.u32.totalorder %s277_s27, %s391_s7 }
 0x1d5   :  { %p283_p7 = pnand %p281_p6, %p278_p5 }
 0x1d7   :  { %286 = shalt.err (!%p283_p7)
}
 0x1d8   :  { %220 = dma.vmem_to_hbm [thread:$0]  %s218_s5, 128, %s391_s7, [#allocation4]  }
 0x1d9   :  { %287 = dma.done.wait [#allocation4], 128  }
 0x1da   :  { %288 = vsyncadd [#allocation4], 4294967168 }
 0x1db   :  { %224 = vsyncpa [#allocation4], 1 }

</bundles_post_ra>
